<compile_context>
chip_gen: v7x
topology: tpu7x:2x2x1
jax: 0.10.0
libtpu: 0.0.40
codegen_flags: <defaults>
</compile_context>

<pallas_src>
import functools

import jax
import jax.numpy as jnp
from jax.experimental import pallas as pl
from jax.experimental.pallas import tpu as pltpu

# ------------------------- synthetic SMPL-H sizes -------------------------
NUM_BODY_JOINTS = 21
NUM_HAND_JOINTS = 15
NUM_JOINTS = NUM_BODY_JOINTS + 2 * NUM_HAND_JOINTS      # 51 (without root)
NJ = NUM_JOINTS + 1                                     # 52 joint rotations
NUM_BETAS = 10
NUM_PCA = 45                                            # num_pca_comps (full hand space)
V = 256                                                 # synthetic vertex count (real SMPL-H: 6890)
P = NUM_JOINTS * 9                                      # 459 pose-blend features
F_FEAT = NUM_BETAS + P                                  # 469 fused blend features
J3 = 3 * NJ                                             # 156 flattened joint coords


def _round_up(x, m):
    return ((x + m - 1) // m) * m


# lane tile over vertices; whole (padded) V in one step when it fits.
TV = min(1024, _round_up(V, 128))
V_PAD = _round_up(V, TV)
N_TILES = V_PAD // TV

# SMPL-H kinematic tree (parents); root = -1
PARENTS = [-1, 0, 0, 0, 1, 2, 3, 4, 5, 6, 7, 8, 9, 9, 9, 12, 13, 14, 16, 17,
           18, 19,
           # left hand fingers, parent = left wrist (20)
           20, 22, 23, 20, 25, 26, 20, 28, 29, 20, 31, 32, 20, 34, 35,
           # right hand fingers, parent = right wrist (21)
           21, 37, 38, 21, 40, 41, 21, 43, 44, 21, 46, 47, 21, 49, 50]
assert len(PARENTS) == NJ


# =========================== Pallas kernel ================================
def _fused_blend_skin_kernel(feat_ref, wx_ref, wy_ref, wz_ref, vt_ref,
                             a12_ref, lw_ref, out_ref):
    """Fused blend shapes + LBS skinning on one lane-dense V tile.

    Per grid step j (one TV-wide slice of the vertex axis):
      v_posed[c] = v_template[c] + [betas|pose_feature] @ W[c]   (bf16 weights, f32 acc)
      T          = A12 @ lbs_weights_T                            (blended 3x4 transforms)
      out[c]     = T[c,0]*x + T[c,1]*y + T[c,2]*z + T[c,3]        (VPU affine)
    """
    feat = feat_ref[...]                                               # (B, F) bf16
    x = vt_ref[0:1, :] + jnp.dot(feat, wx_ref[...],
                                 preferred_element_type=jnp.float32)   # (B, TV)
    y = vt_ref[1:2, :] + jnp.dot(feat, wy_ref[...],
                                 preferred_element_type=jnp.float32)
    z = vt_ref[2:3, :] + jnp.dot(feat, wz_ref[...],
                                 preferred_element_type=jnp.float32)

    # blended per-vertex transforms; rows ordered (coord c, column k, batch b)
    T = jnp.dot(a12_ref[...], lw_ref[...],
                preferred_element_type=jnp.float32)                    # (12B, TV)
    B = feat.shape[0]
    for c in range(3):
        base = 4 * B * c
        out_ref[c] = (T[base:base + B] * x
                      + T[base + B:base + 2 * B] * y
                      + T[base + 2 * B:base + 3 * B] * z
                      + T[base + 3 * B:base + 4 * B])                  # (B, TV) lane-dense


def fused_blend_skin_pallas(feat_bf16, Wx, Wy, Wz, vt_planar, a12_bf16, lw_T):
    B = feat_bf16.shape[0]
    return pl.pallas_call(
        _fused_blend_skin_kernel,
        out_shape=jax.ShapeDtypeStruct((3, B, V_PAD), jnp.float32),
        grid=(N_TILES,),
        in_specs=[
            pl.BlockSpec((B, F_FEAT), lambda j: (0, 0)),
            pl.BlockSpec((F_FEAT, TV), lambda j: (0, j)),
            pl.BlockSpec((F_FEAT, TV), lambda j: (0, j)),
            pl.BlockSpec((F_FEAT, TV), lambda j: (0, j)),
            pl.BlockSpec((3, TV), lambda j: (0, j)),
            pl.BlockSpec((12 * B, NJ), lambda j: (0, 0)),
            pl.BlockSpec((NJ, TV), lambda j: (0, j)),
        ],
        out_specs=pl.BlockSpec((3, B, TV), lambda j: (0, 0, j)),
        compiler_params=pltpu.CompilerParams(
            dimension_semantics=("parallel",)),
    )(feat_bf16, Wx, Wy, Wz, vt_planar, a12_bf16, lw_T)


# =========================== plain-JAX glue ================================
def batch_rodrigues(rot_vecs):
    """rot_vecs: (N, 3) axis-angle -> (N, 3, 3) rotation matrices."""
    n = rot_vecs.shape[0]
    angle = jnp.linalg.norm(rot_vecs + 1e-8, axis=1, keepdims=True)        # (N, 1)
    rot_dir = rot_vecs / angle
    cos = jnp.cos(angle)[:, None, :]                                       # (N, 1, 1)
    sin = jnp.sin(angle)[:, None, :]
    rx, ry, rz = jnp.split(rot_dir, 3, axis=1)                             # (N, 1) each
    zeros = jnp.zeros((n, 1), dtype=rot_vecs.dtype)
    K = jnp.concatenate(
        [zeros, -rz, ry, rz, zeros, -rx, -ry, rx, zeros], axis=1).reshape(n, 3, 3)
    ident = jnp.eye(3, dtype=rot_vecs.dtype)[None]
    return ident + sin * K + (1.0 - cos) * jnp.matmul(K, K)


def batch_rigid_transform(rot_mats, joints, parents):
    """rot_mats (B,NJ,3,3), joints (B,NJ,3) -> posed_joints (B,NJ,3), rel_transforms (B,NJ,4,4)."""
    parent_idx = jnp.array(parents[1:], dtype=jnp.int32)
    rel_joints = joints.at[:, 1:].add(-joints[:, parent_idx])
    t = rel_joints[..., None]                                              # (B,NJ,3,1)
    top = jnp.concatenate([rot_mats, t], axis=-1)                          # (B,NJ,3,4)
    bottom = jnp.broadcast_to(
        jnp.array([0.0, 0.0, 0.0, 1.0], dtype=joints.dtype),
        top[..., :1, :].shape)                                             # (B,NJ,1,4)
    transforms_mat = jnp.concatenate([top, bottom], axis=-2)               # (B,NJ,4,4)

    chain = [transforms_mat[:, 0]]
    for i in range(1, len(parents)):
        chain.append(jnp.matmul(chain[parents[i]], transforms_mat[:, i]))
    transforms = jnp.stack(chain, axis=1)                                  # (B,NJ,4,4)

    posed_joints = transforms[:, :, :3, 3]
    joints_h = jnp.concatenate([joints, jnp.zeros_like(joints[..., :1])], axis=-1)
    correction = jnp.einsum('bnij,bnj->bni', transforms, joints_h)         # (B,NJ,4)
    rel_transforms = transforms - jnp.pad(
        correction[..., None], ((0, 0), (0, 0), (0, 0), (3, 0)))
    return posed_joints, rel_transforms


def body_model_forward(params, root_orient, pose_body, pose_hand, betas, trans):
    """Mirrors BodyModel.forward for model_type='smplh', use_pca=True, flat_hand_mean=False."""
    B = betas.shape[0]

    # PCA hand pose (left / right split as in the wrapper)
    lh_coeffs = pose_hand[:, :NUM_PCA]
    rh_coeffs = pose_hand[:, NUM_PCA:]
    left_hand_pose = jnp.einsum('bi,ij->bj', lh_coeffs, params['hands_componentsl'])
    right_hand_pose = jnp.einsum('bi,ij->bj', rh_coeffs, params['hands_componentsr'])

    full_pose = jnp.concatenate(
        [root_orient, pose_body, left_hand_pose, right_hand_pose], axis=1)
    full_pose = full_pose + params['pose_mean'][None]                      # (B, 156)

    rot_mats = batch_rodrigues(full_pose.reshape(-1, 3)).reshape(B, NJ, 3, 3)
    ident = jnp.eye(3, dtype=jnp.float32)
    pose_feature = (rot_mats[:, 1:] - ident).reshape(B, P)

    # --- joints from the beta-only precompute (tiny matmul, plain JAX) ---
    J = params['J_template'][None] + (betas @ params['J_dirs']).reshape(B, NJ, 3)

    # sequential kinematic chain (52 joints, tiny) stays in JAX
    posed_joints, rel_transforms = batch_rigid_transform(rot_mats, J, PARENTS)

    # only the top 3x4 rows of each 4x4 are used by skinning;
    # arrange rows as (coord c, column k, batch b) for lane-dense kernel slicing
    A = rel_transforms[:, :, :3, :]                                        # (B,NJ,3,4)
    a12 = jnp.transpose(A, (2, 3, 0, 1)).reshape(12 * B, NJ).astype(jnp.bfloat16)

    # fused blend feature: [betas | pose_feature]
    feat = jnp.concatenate([betas, pose_feature], axis=1).astype(jnp.bfloat16)

    # --- Pallas hot path: fused blend shapes + LBS skinning, tiled over V ---
    verts_planar = fused_blend_skin_pallas(
        feat, params['Wx'], params['Wy'], params['Wz'],
        params['v_template_planar'], a12, params['lbs_weights_T'])         # (3, B, V_PAD)

    verts = jnp.transpose(verts_planar[:, :, :V], (1, 2, 0)) + trans[:, None, :]
    joints = posed_joints + trans[:, None, :]

    out = {
        'v': verts,
        'f': params['faces'],
        'betas': betas,
        # use_vtx_selector=False -> keep only the num_joints+1 regressed joints
        'Jtr': joints[:, :NUM_JOINTS + 1],
        'pose_body': pose_body,
        'full_pose': full_pose,
        'pose_hand': jnp.concatenate([left_hand_pose, right_hand_pose], axis=-1),
    }
    return out


# =========================== parameter setup ===============================
def make_params(key):
    keys = jax.random.split(key, 10)
    v_template = 0.1 * jax.random.normal(keys[0], (V, 3), jnp.float32)
    shapedirs = 0.01 * jax.random.normal(keys[1], (V, 3, NUM_BETAS), jnp.float32)
    posedirs = 0.01 * jax.random.normal(keys[2], (P, 3, V), jnp.float32)
    J_regressor = jax.nn.softmax(
        jax.random.normal(keys[3], (NJ, V), jnp.float32), axis=1)
    lbs_weights = jax.nn.softmax(
        jax.random.normal(keys[4], (V, NJ), jnp.float32), axis=1)
    hands_componentsl = 0.1 * jax.random.normal(keys[5], (NUM_PCA, 45), jnp.float32)
    hands_componentsr = 0.1 * jax.random.normal(keys[6], (NUM_PCA, 45), jnp.float32)
    hands_meanl = 0.1 * jax.random.normal(keys[7], (45,), jnp.float32)
    hands_meanr = 0.1 * jax.random.normal(keys[8], (45,), jnp.float32)
    # flat_hand_mean=False -> pose_mean carries the hand means
    pose_mean = jnp.concatenate(
        [jnp.zeros(3 + 3 * NUM_BODY_JOINTS, jnp.float32), hands_meanl, hands_meanr])

    def pad_v(a):  # zero-pad last (vertex) axis V -> V_PAD
        return jnp.pad(a, [(0, 0)] * (a.ndim - 1) + [(0, V_PAD - V)])

    # fused blend weight, one (F_FEAT, V_PAD) bf16 slab per coordinate plane:
    #   rows 0..NUM_BETAS-1 = shapedirs, rows NUM_BETAS.. = posedirs
    w_planes = []
    for c in range(3):
        shape_c = shapedirs[:, c, :].T                   # (NUM_BETAS, V)
        pose_c = posedirs[:, c, :]                       # (P, V)
        w_planes.append(pad_v(jnp.concatenate([shape_c, pose_c], axis=0)))
    Wx, Wy, Wz = [w.astype(jnp.bfloat16) for w in w_planes]

    v_template_planar = pad_v(v_template.T)              # (3, V_PAD) f32

    # joint-regression precompute: J depends only on betas (pose blend excluded, as in SMPL)
    J_template = J_regressor @ v_template                               # (NJ, 3)
    J_dirs = jnp.einsum('nv,vcb->bnc', J_regressor, shapedirs)          # (NUM_BETAS, NJ, 3)
    J_dirs = J_dirs.reshape(NUM_BETAS, J3)

    lbs_weights_T = pad_v(lbs_weights.T).astype(jnp.bfloat16)           # (NJ, V_PAD) bf16

    n_faces = 128
    idx = jnp.arange(n_faces, dtype=jnp.int32)
    faces = jnp.stack([idx % V, (idx + 1) % V, (idx + 2) % V], axis=1)

    return {
        'Wx': Wx, 'Wy': Wy, 'Wz': Wz,                    # (469, V_PAD) bf16 each
        'v_template_planar': v_template_planar,          # (3, V_PAD) f32
        'J_template': J_template,                        # (NJ, 3) f32
        'J_dirs': J_dirs,                                # (NUM_BETAS, 3*NJ) f32
        'lbs_weights_T': lbs_weights_T,                  # (NJ, V_PAD) bf16
        'hands_componentsl': hands_componentsl,
        'hands_componentsr': hands_componentsr,
        'pose_mean': pose_mean,
        'faces': faces,
    }


# TODO(synk): loading real SMPL-H/.npz body-model data and the VertexJointSelector
# extra OpenPose vertices are not reproducible in-script; synthetic deterministic
# parameters are used and extra joints are (as in use_vtx_selector=False) discarded.

if __name__ == "__main__":
    key = jax.random.PRNGKey(0)
    pkey, ikey = jax.random.split(key)
    params = make_params(pkey)

    B = 2
    ks = jax.random.split(ikey, 5)
    root_orient = 0.1 * jax.random.normal(ks[0], (B, 3), jnp.float32)
    pose_body = 0.1 * jax.random.normal(ks[1], (B, 3 * NUM_BODY_JOINTS), jnp.float32)
    pose_hand = 0.1 * jax.random.normal(ks[2], (B, 2 * NUM_PCA), jnp.float32)
    betas = 0.5 * jax.random.normal(ks[3], (B, NUM_BETAS), jnp.float32)
    trans = 0.1 * jax.random.normal(ks[4], (B, 3), jnp.float32)

    fwd = jax.jit(functools.partial(body_model_forward, params))
    out = fwd(root_orient, pose_body, pose_hand, betas, trans)
    jax.block_until_ready(out)

    assert out['v'].shape == (B, V, 3)
    assert out['Jtr'].shape == (B, NUM_JOINTS + 1, 3)
    assert out['full_pose'].shape == (B, 3 * NJ)
    assert out['pose_hand'].shape == (B, 90)
    assert bool(jnp.all(jnp.isfinite(out['v'])))
    assert bool(jnp.all(jnp.isfinite(out['Jtr'])))
    print("KERNEL_OK")
</pallas_src>

<mosaic_0001>
module attributes {stable_mosaic.version = 11 : i64} {
  func.func @_fused_blend_skin_kernel(%arg0: i32, %arg1: memref<2x469xbf16, #tpu.memory_space<vmem>>, %arg2: memref<469x256xbf16, #tpu.memory_space<vmem>>, %arg3: memref<469x256xbf16, #tpu.memory_space<vmem>>, %arg4: memref<469x256xbf16, #tpu.memory_space<vmem>>, %arg5: memref<3x256xf32, #tpu.memory_space<vmem>>, %arg6: memref<24x52xbf16, #tpu.memory_space<vmem>>, %arg7: memref<52x256xbf16, #tpu.memory_space<vmem>>, %arg8: memref<3x2x256xf32, #tpu.memory_space<vmem>>) attributes {dimension_semantics = [#tpu.dimension_semantics<parallel>], iteration_bounds = array<i64: 1>, scalar_prefetch = 0 : i64, scratch_operands = 0 : i64, tpu.core_type = #tpu.core_type<tc>, window_params = [{pipeline_mode = #tpu.pipeline_mode<synchronous>, transform_indices = @transform_0, window_bounds = array<i64: 2, 469>}, {transform_indices = @transform_1, window_bounds = array<i64: 469, 256>}, {transform_indices = @transform_2, window_bounds = array<i64: 469, 256>}, {transform_indices = @transform_3, window_bounds = array<i64: 469, 256>}, {transform_indices = @transform_4, window_bounds = array<i64: 3, 256>}, {pipeline_mode = #tpu.pipeline_mode<synchronous>, transform_indices = @transform_5, window_bounds = array<i64: 24, 52>}, {transform_indices = @transform_6, window_bounds = array<i64: 52, 256>}, {transform_indices = @transform_7, window_bounds = array<i64: 3, 2, 256>}]} {
    %c0 = arith.constant 0 : index
    %c0_0 = arith.constant 0 : index
    %0 = vector.load %arg1[%c0, %c0_0] : memref<2x469xbf16, #tpu.memory_space<vmem>>, vector<2x469xbf16>
    %c0_1 = arith.constant 0 : index
    %c0_2 = arith.constant 0 : index
    %1 = vector.load %arg5[%c0_1, %c0_2] : memref<3x256xf32, #tpu.memory_space<vmem>>, vector<1x256xf32>
    %c0_3 = arith.constant 0 : index
    %c0_4 = arith.constant 0 : index
    %2 = vector.load %arg2[%c0_3, %c0_4] : memref<469x256xbf16, #tpu.memory_space<vmem>>, vector<469x256xbf16>
    %cst = arith.constant dense<0.000000e+00> : vector<2x256xf32>
    %3 = tpu.matmul %0, %2, %cst {dimension_numbers = #tpu.dot_dimension_numbers<[1], [0], [0], [1], [0, 0, 1, 1], [], []>} : vector<2x469xbf16>, vector<469x256xbf16>, vector<2x256xf32> -> vector<2x256xf32>
    %4 = vector.broadcast %1 : vector<1x256xf32> to vector<2x256xf32>
    %5 = arith.addf %4, %3 : vector<2x256xf32>
    %c1 = arith.constant 1 : index
    %c0_5 = arith.constant 0 : index
    %6 = vector.load %arg5[%c1, %c0_5] : memref<3x256xf32, #tpu.memory_space<vmem>>, vector<1x256xf32>
    %c0_6 = arith.constant 0 : index
    %c0_7 = arith.constant 0 : index
    %7 = vector.load %arg3[%c0_6, %c0_7] : memref<469x256xbf16, #tpu.memory_space<vmem>>, vector<469x256xbf16>
    %cst_8 = arith.constant dense<0.000000e+00> : vector<2x256xf32>
    %8 = tpu.matmul %0, %7, %cst_8 {dimension_numbers = #tpu.dot_dimension_numbers<[1], [0], [0], [1], [0, 0, 1, 1], [], []>} : vector<2x469xbf16>, vector<469x256xbf16>, vector<2x256xf32> -> vector<2x256xf32>
    %9 = vector.broadcast %6 : vector<1x256xf32> to vector<2x256xf32>
    %10 = arith.addf %9, %8 : vector<2x256xf32>
    %c2 = arith.constant 2 : index
    %c0_9 = arith.constant 0 : index
    %11 = vector.load %arg5[%c2, %c0_9] : memref<3x256xf32, #tpu.memory_space<vmem>>, vector<1x256xf32>
    %c0_10 = arith.constant 0 : index
    %c0_11 = arith.constant 0 : index
    %12 = vector.load %arg4[%c0_10, %c0_11] : memref<469x256xbf16, #tpu.memory_space<vmem>>, vector<469x256xbf16>
    %cst_12 = arith.constant dense<0.000000e+00> : vector<2x256xf32>
    %13 = tpu.matmul %0, %12, %cst_12 {dimension_numbers = #tpu.dot_dimension_numbers<[1], [0], [0], [1], [0, 0, 1, 1], [], []>} : vector<2x469xbf16>, vector<469x256xbf16>, vector<2x256xf32> -> vector<2x256xf32>
    %14 = vector.broadcast %11 : vector<1x256xf32> to vector<2x256xf32>
    %15 = arith.addf %14, %13 : vector<2x256xf32>
    %c0_13 = arith.constant 0 : index
    %c0_14 = arith.constant 0 : index
    %16 = vector.load %arg6[%c0_13, %c0_14] : memref<24x52xbf16, #tpu.memory_space<vmem>>, vector<24x52xbf16>
    %c0_15 = arith.constant 0 : index
    %c0_16 = arith.constant 0 : index
    %17 = vector.load %arg7[%c0_15, %c0_16] : memref<52x256xbf16, #tpu.memory_space<vmem>>, vector<52x256xbf16>
    %cst_17 = arith.constant dense<0.000000e+00> : vector<24x256xf32>
    %18 = tpu.matmul %16, %17, %cst_17 {dimension_numbers = #tpu.dot_dimension_numbers<[1], [0], [0], [1], [0, 0, 1, 1], [], []>} : vector<24x52xbf16>, vector<52x256xbf16>, vector<24x256xf32> -> vector<24x256xf32>
    %19 = vector.extract_strided_slice %18 {offsets = [0, 0], sizes = [2, 256], strides = [1, 1]} : vector<24x256xf32> to vector<2x256xf32>
    %20 = arith.mulf %19, %5 : vector<2x256xf32>
    %21 = vector.extract_strided_slice %18 {offsets = [2, 0], sizes = [2, 256], strides = [1, 1]} : vector<24x256xf32> to vector<2x256xf32>
    %22 = arith.mulf %21, %10 : vector<2x256xf32>
    %23 = arith.addf %20, %22 : vector<2x256xf32>
    %24 = vector.extract_strided_slice %18 {offsets = [4, 0], sizes = [2, 256], strides = [1, 1]} : vector<24x256xf32> to vector<2x256xf32>
    %25 = arith.mulf %24, %15 : vector<2x256xf32>
    %26 = arith.addf %23, %25 : vector<2x256xf32>
    %27 = vector.extract_strided_slice %18 {offsets = [6, 0], sizes = [2, 256], strides = [1, 1]} : vector<24x256xf32> to vector<2x256xf32>
    %28 = arith.addf %26, %27 : vector<2x256xf32>
    %c0_18 = arith.constant 0 : index
    %c0_19 = arith.constant 0 : index
    %c0_20 = arith.constant 0 : index
    %29 = vector.load %arg8[%c0_18, %c0_19, %c0_20] : memref<3x2x256xf32, #tpu.memory_space<vmem>>, vector<1x2x256xf32>
    %30 = vector.shape_cast %29 : vector<1x2x256xf32> to vector<2x256xf32>
    %31 = vector.shape_cast %28 : vector<2x256xf32> to vector<1x2x256xf32>
    tpu.vector_store %arg8[%c0_18, %c0_19, %c0_20], %31 {strides = array<i32>} : memref<3x2x256xf32, #tpu.memory_space<vmem>>, vector<1x2x256xf32>,
    %32 = vector.extract_strided_slice %18 {offsets = [8, 0], sizes = [2, 256], strides = [1, 1]} : vector<24x256xf32> to vector<2x256xf32>
    %33 = arith.mulf %32, %5 : vector<2x256xf32>
    %34 = vector.extract_strided_slice %18 {offsets = [10, 0], sizes = [2, 256], strides = [1, 1]} : vector<24x256xf32> to vector<2x256xf32>
    %35 = arith.mulf %34, %10 : vector<2x256xf32>
    %36 = arith.addf %33, %35 : vector<2x256xf32>
    %37 = vector.extract_strided_slice %18 {offsets = [12, 0], sizes = [2, 256], strides = [1, 1]} : vector<24x256xf32> to vector<2x256xf32>
    %38 = arith.mulf %37, %15 : vector<2x256xf32>
    %39 = arith.addf %36, %38 : vector<2x256xf32>
    %40 = vector.extract_strided_slice %18 {offsets = [14, 0], sizes = [2, 256], strides = [1, 1]} : vector<24x256xf32> to vector<2x256xf32>
    %41 = arith.addf %39, %40 : vector<2x256xf32>
    %c1_21 = arith.constant 1 : index
    %c0_22 = arith.constant 0 : index
    %c0_23 = arith.constant 0 : index
    %42 = vector.load %arg8[%c1_21, %c0_22, %c0_23] : memref<3x2x256xf32, #tpu.memory_space<vmem>>, vector<1x2x256xf32>
    %43 = vector.shape_cast %42 : vector<1x2x256xf32> to vector<2x256xf32>
    %44 = vector.shape_cast %41 : vector<2x256xf32> to vector<1x2x256xf32>
    tpu.vector_store %arg8[%c1_21, %c0_22, %c0_23], %44 {strides = array<i32>} : memref<3x2x256xf32, #tpu.memory_space<vmem>>, vector<1x2x256xf32>,
    %45 = vector.extract_strided_slice %18 {offsets = [16, 0], sizes = [2, 256], strides = [1, 1]} : vector<24x256xf32> to vector<2x256xf32>
    %46 = arith.mulf %45, %5 : vector<2x256xf32>
    %47 = vector.extract_strided_slice %18 {offsets = [18, 0], sizes = [2, 256], strides = [1, 1]} : vector<24x256xf32> to vector<2x256xf32>
    %48 = arith.mulf %47, %10 : vector<2x256xf32>
    %49 = arith.addf %46, %48 : vector<2x256xf32>
    %50 = vector.extract_strided_slice %18 {offsets = [20, 0], sizes = [2, 256], strides = [1, 1]} : vector<24x256xf32> to vector<2x256xf32>
    %51 = arith.mulf %50, %15 : vector<2x256xf32>
    %52 = arith.addf %49, %51 : vector<2x256xf32>
    %53 = vector.extract_strided_slice %18 {offsets = [22, 0], sizes = [2, 256], strides = [1, 1]} : vector<24x256xf32> to vector<2x256xf32>
    %54 = arith.addf %52, %53 : vector<2x256xf32>
    %c2_24 = arith.constant 2 : index
    %c0_25 = arith.constant 0 : index
    %c0_26 = arith.constant 0 : index
    %55 = vector.load %arg8[%c2_24, %c0_25, %c0_26] : memref<3x2x256xf32, #tpu.memory_space<vmem>>, vector<1x2x256xf32>
    %56 = vector.shape_cast %55 : vector<1x2x256xf32> to vector<2x256xf32>
    %57 = vector.shape_cast %54 : vector<2x256xf32> to vector<1x2x256xf32>
    tpu.vector_store %arg8[%c2_24, %c0_25, %c0_26], %57 {strides = array<i32>} : memref<3x2x256xf32, #tpu.memory_space<vmem>>, vector<1x2x256xf32>,
    return
  }
  func.func @transform_0(%arg0: i32) -> (i32, i32) {
    %c0_i32 = arith.constant 0 : i32
    %c0_i32_0 = arith.constant 0 : i32
    %c0_i32_1 = arith.constant 0 : i32
    return %c0_i32, %c0_i32_0 : i32, i32
  }
  func.func @transform_1(%arg0: i32) -> (i32, i32) {
    %c0_i32 = arith.constant 0 : i32
    %c0_i32_0 = arith.constant 0 : i32
    return %c0_i32, %arg0 : i32, i32
  }
  func.func @transform_2(%arg0: i32) -> (i32, i32) {
    %c0_i32 = arith.constant 0 : i32
    %c0_i32_0 = arith.constant 0 : i32
    return %c0_i32, %arg0 : i32, i32
  }
  func.func @transform_3(%arg0: i32) -> (i32, i32) {
    %c0_i32 = arith.constant 0 : i32
    %c0_i32_0 = arith.constant 0 : i32
    return %c0_i32, %arg0 : i32, i32
  }
  func.func @transform_4(%arg0: i32) -> (i32, i32) {
    %c0_i32 = arith.constant 0 : i32
    %c0_i32_0 = arith.constant 0 : i32
    return %c0_i32, %arg0 : i32, i32
  }
  func.func @transform_5(%arg0: i32) -> (i32, i32) {
    %c0_i32 = arith.constant 0 : i32
    %c0_i32_0 = arith.constant 0 : i32
    %c0_i32_1 = arith.constant 0 : i32
    return %c0_i32, %c0_i32_0 : i32, i32
  }
  func.func @transform_6(%arg0: i32) -> (i32, i32) {
    %c0_i32 = arith.constant 0 : i32
    %c0_i32_0 = arith.constant 0 : i32
    return %c0_i32, %arg0 : i32, i32
  }
  func.func @transform_7(%arg0: i32) -> (i32, i32, i32) {
    %c0_i32 = arith.constant 0 : i32
    %c0_i32_0 = arith.constant 0 : i32
    %c0_i32_1 = arith.constant 0 : i32
    return %c0_i32, %c0_i32_0, %arg0 : i32, i32, i32
  }
}

</mosaic_0001>

<bundles_post_ra>
// kernel: body_model_forward.1
= control target key start
LH: loop header
LB: loop body
LE: loop exit
PB: predicated region body
PF: predicated region fallthrough
CT: control target
= control target key end

     0   :  { %v2182_v31 = vmov 1966171168   ;;  %v100_v33 = vlaneseq  ;;  %vm415_vm0 = vcmask 1041408   ;;  %vm411_vm1 = vcmask 695296   ;;  %s2847_s1 = inlined_call_operand.vmem [shape: bf16[469,256], index: 1, kind: input, shape index: {}]   ;;  %s2848_s0 = inlined_call_operand.vmem [shape: bf16[2,469], index: 0, kind: input, shape index: {}]   ;;  %s2849_s2 = inlined_call_operand.vmem [shape: bf16[469,256], index: 2, kind: input, shape index: {}]   ;;  %s2850_s3 = inlined_call_operand.vmem [shape: bf16[469,256], index: 3, kind: input, shape index: {}]   ;;  %s2851_s6 = inlined_call_operand.vmem [shape: bf16[52,256], index: 6, kind: input, shape index: {}]   ;;  %s2852_s5 = inlined_call_operand.vmem [shape: bf16[24,52], index: 5, kind: input, shape index: {}]   ;;  %s2853_s4 = inlined_call_operand.vmem [shape: f32[3,256], index: 4, kind: input, shape index: {}]   ;;  %s2854_s7 = inlined_call_operand.vmem [shape: f32[3,2,256], index: 7, kind: output, shape index: {}]  }
   0x1   :  { %v1902_v0 = vld [vmem:[%s2847_s1 + $0x4] ss:$8 sps:$4 sm:$0xff]   ;;  %v1906_v2 = vld [vmem:[%s2847_s1] ss:$8 sps:$4 sm:$0xff]   ;;  %v1908_v4 = vld [vmem:[%s2847_s1 + $0x14] ss:$8 sps:$4 sm:$0xff]   ;;  %v98_v32 = vunpack.c.l.s4 %v2182_v31 }
   0x2   :  { %v1904_v1 = vld [vmem:[%s2847_s1 + $0x104] ss:$8 sps:$4 sm:$0xff]   ;;  %425 = vmatprep.subr.bf16.mxu0 %v1902_v0  ;;  %v1907_v3 = vld [vmem:[%s2847_s1 + $0x100] ss:$8 sps:$4 sm:$0xff]   ;;  %v1910_v5 = vld [vmem:[%s2847_s1 + $0x114] ss:$8 sps:$4 sm:$0xff]  }
   0x3   :  { %466 = vmatprep.subr.bf16.mxu1 %v1904_v1  ;;  %426 = vmatpush1.bf16.msra.mxu0 %v1906_v2  ;;  %v1912_v6 = vld [vmem:[%s2847_s1 + $0x10] ss:$8 sps:$4 sm:$0xff]   ;;  %v1914_v8 = vld [vmem:[%s2847_s1 + $0x24] ss:$8 sps:$4 sm:$0xff]   ;;  %v1918_v10 = vld [vmem:[%s2847_s1 + $0x20] ss:$8 sps:$4 sm:$0xff]   ;;  %v99_v39 = vunpack.c.0.s8 %v98_v32 }
   0x4   :  { %467 = vmatpush1.bf16.msra.mxu1 %v1907_v3  ;;  %427 = vmatprep.subr.bf16.mxu0 %v1908_v4  ;;  %v1913_v7 = vld [vmem:[%s2847_s1 + $0x110] ss:$8 sps:$4 sm:$0xff]   ;;  %v1916_v9 = vld [vmem:[%s2847_s1 + $0x124] ss:$8 sps:$4 sm:$0xff]   ;;  %v1919_v11 = vld [vmem:[%s2847_s1 + $0x120] ss:$8 sps:$4 sm:$0xff]  }
   0x5   :  { %468 = vmatprep.subr.bf16.mxu1 %v1910_v5  ;;  %v1920_v12 = vld [vmem:[%s2847_s1 + $0x34] ss:$8 sps:$4 sm:$0xff]   ;;  %v1924_v14 = vld [vmem:[%s2847_s1 + $0x30] ss:$8 sps:$4 sm:$0xff]   ;;  %v1926_v16 = vld [vmem:[%s2847_s1 + $0x44] ss:$8 sps:$4 sm:$0xff]  }
   0x6   :  { %v1922_v13 = vld [vmem:[%s2847_s1 + $0x134] ss:$8 sps:$4 sm:$0xff]   ;;  %v1925_v15 = vld [vmem:[%s2847_s1 + $0x130] ss:$8 sps:$4 sm:$0xff]   ;;  %v1928_v17 = vld [vmem:[%s2847_s1 + $0x144] ss:$8 sps:$4 sm:$0xff]  }
   0x7   :  { %428 = vmatpush1.bf16.msra.mxu0 %v1912_v6  ;;  %v1930_v18 = vld [vmem:[%s2847_s1 + $0x40] ss:$8 sps:$4 sm:$0xff]   ;;  %v1932_v20 = vld [vmem:[%s2847_s1 + $0x54] ss:$8 sps:$4 sm:$0xff]   ;;  %v1936_v22 = vld [vmem:[%s2847_s1 + $0x50] ss:$8 sps:$4 sm:$0xff]  }
   0x8   :  { %469 = vmatpush1.bf16.msra.mxu1 %v1913_v7  ;;  %429 = vmatprep.subr.bf16.mxu0 %v1914_v8  ;;  %v1931_v19 = vld [vmem:[%s2847_s1 + $0x140] ss:$8 sps:$4 sm:$0xff]   ;;  %v1934_v21 = vld [vmem:[%s2847_s1 + $0x154] ss:$8 sps:$4 sm:$0xff]   ;;  %v1937_v23 = vld [vmem:[%s2847_s1 + $0x150] ss:$8 sps:$4 sm:$0xff]  }
   0x9   :  { %470 = vmatprep.subr.bf16.mxu1 %v1916_v9  ;;  %v1938_v24 = vld [vmem:[%s2847_s1 + $0x64] ss:$8 sps:$4 sm:$0xff]   ;;  %v1942_v26 = vld [vmem:[%s2847_s1 + $0x60] ss:$8 sps:$4 sm:$0xff]   ;;  %v1944_v28 = vld [vmem:[%s2847_s1 + $0x74] ss:$8 sps:$4 sm:$0xff]  }
   0xa   :  { %v1940_v25 = vld [vmem:[%s2847_s1 + $0x164] ss:$8 sps:$4 sm:$0xff]   ;;  %v1943_v27 = vld [vmem:[%s2847_s1 + $0x160] ss:$8 sps:$4 sm:$0xff]   ;;  %v1946_v29 = vld [vmem:[%s2847_s1 + $0x174] ss:$8 sps:$4 sm:$0xff]  }
   0xb   :  { %430 = vmatpush1.bf16.msra.mxu0 %v1918_v10  ;;  %v1948_v30 = vld [vmem:[%s2847_s1 + $0x70] ss:$8 sps:$4 sm:$0xff]   ;;  %v1950_v35 = vld [vmem:[%s2847_s1 + $0x84] ss:$8 sps:$4 sm:$0xff]   ;;  %v1954_v37 = vld [vmem:[%s2847_s1 + $0x80] ss:$8 sps:$4 sm:$0xff]  }
   0xc   :  { %471 = vmatpush1.bf16.msra.mxu1 %v1919_v11  ;;  %431 = vmatprep.subr.bf16.mxu0 %v1920_v12  ;;  %v1949_v34 = vld [vmem:[%s2847_s1 + $0x170] ss:$8 sps:$4 sm:$0xff]   ;;  %v1952_v36 = vld [vmem:[%s2847_s1 + $0x184] ss:$8 sps:$4 sm:$0xff]   ;;  %v1955_v38 = vld [vmem:[%s2847_s1 + $0x180] ss:$8 sps:$4 sm:$0xff]  }
   0xd   :  { %472 = vmatprep.subr.bf16.mxu1 %v1922_v13  ;;  %v2333_v40 = vshrl.u32 %v100_v33, 7  ;;  %v1956_v41 = vld [vmem:[%s2847_s1 + $0x94] ss:$8 sps:$4 sm:$0xff]   ;;  %v1960_v43 = vld [vmem:[%s2847_s1 + $0x90] ss:$8 sps:$4 sm:$0xff]   ;;  %vm416_vm2 = vcmask 1042432  }
   0xe   :  { %v1958_v42 = vld [vmem:[%s2847_s1 + $0x194] ss:$8 sps:$4 sm:$0xff]   ;;  %v1961_v44 = vld [vmem:[%s2847_s1 + $0x190] ss:$8 sps:$4 sm:$0xff]   ;;  %v1962_v46 = vld [vmem:[%s2847_s1 + $0xa4] ss:$8 sps:$4 sm:$0xff]  }
   0xf   :  { %432 = vmatpush1.bf16.msra.mxu0 %v1924_v14  ;;  %v102_v45 = vsub.s32 %v99_v39, %v2333_v40  ;;  %v1695_v47 = vld.sshfl [vmem:[%s2848_s0] sm:$0x33 pattern:$0x75316420]  ;;  %v1964_v48 = vld [vmem:[%s2847_s1 + $0x1a4] ss:$8 sps:$4 sm:$0xff]  }
  0x10   :  { %473 = vmatpush1.bf16.msra.mxu1 %v1925_v15  ;;  %433 = vmatprep.subr.bf16.mxu0 %v1926_v16  ;;  %v96_v49 = vcombine.high %v1695_v47, %v1695_v47  ;;  %v1966_v50 = vld [vmem:[%s2847_s1 + $0xa0] ss:$8 sps:$4 sm:$0xff]   ;;  %v1968_v53 = vld [vmem:[%s2847_s1 + $0xb4] ss:$8 sps:$4 sm:$0xff]   ;;  %v1972_v57 = vld [vmem:[%s2847_s1 + $0xb0] ss:$8 sps:$4 sm:$0xff]  }
  0x11   :  { %474 = vmatprep.subr.bf16.mxu1 %v1928_v17  ;;  %v1967_v52 = vld [vmem:[%s2847_s1 + $0x1a0] ss:$8 sps:$4 sm:$0xff]   ;;  %v1970_v54 = vld [vmem:[%s2847_s1 + $0x1b4] ss:$8 sps:$4 sm:$0xff]   ;;  %v2183_v58 = vmov 65535   ;;  %v2406_v6 = vrot.slane %v1695_v47, %v102_v45  ;;  %vm1487_vm3 = vcmask 424960  }
  0x12   :  { %v2360_v51 = vrot.slane %v96_v49, %v102_v45  ;;  %v87_v56 = vld [vmem:[%s2847_s1 + $0x1d0] sm:$0x77]  ;;  %v417_v59 = vsel %vm415_vm0, 4294967295, %v2183_v58  ;;  %v1974_v61 = vld [vmem:[%s2847_s1 + $0xc4] ss:$8 sps:$4 sm:$0xff]  }
  0x13   :  { %434 = vmatpush1.bf16.msra.mxu0 %v1930_v18  ;;  %v1973_v60 = vld [vmem:[%s2847_s1 + $0x1b0] ss:$8 sps:$4 sm:$0xff]   ;;  %v1976_v62 = vld [vmem:[%s2847_s1 + $0x1c4] ss:$8 sps:$4 sm:$0xff]   ;;  %v1755_v63 = vcombine.high %v87_v56, %v87_v56  ;;  %v2394_v0 = vsel %vm416_vm2, %v417_v59, 0  ;;  %v1754_v3 = vcombine.low %v87_v56, %v87_v56  ;;  %v2420_v11 = vcombine.high %v2406_v6, %v2406_v6 }
  0x14   :  { %475 = vmatpush1.bf16.msra.mxu1 %v1931_v19  ;;  %435 = vmatprep.subr.bf16.mxu0 %v1932_v20  ;;  %v2373_v55 = vcombine.high %v2360_v51, %v2360_v51  ;;  %v1978_v1 = vld [vmem:[%s2847_s1 + $0xc0] ss:$8 sps:$4 sm:$0xff]   ;;  %v1980_v4 = vld [vmem:[%s2847_s1 + $0xd4] ss:$8 sps:$4 sm:$0xff]   ;;  %v1983_v7 = vld [vmem:[%s2847_s1 + $0xd0] ss:$8 sps:$4 sm:$0xff]  }
  0x15   :  { %476 = vmatprep.subr.bf16.mxu1 %v1934_v21  ;;  %457 = vmatprep.mubr.bf16.mxu0 %v2360_v51  ;;  %v1979_v2 = vld [vmem:[%s2847_s1 + $0x1c0] ss:$8 sps:$4 sm:$0xff]   ;;  %v423_v5 = vand.u32 %v1755_v63, %v2394_v0  ;;  %v420_v8 = vand.u32 %v1754_v3, %v2394_v0  ;;  %v1985_v9 = vld [vmem:[%s2847_s1 + $0xe4] ss:$8 sps:$4 sm:$0xff]   ;;  %v1991_v14 = vld [vmem:[%s2847_s1 + $0xf4] ss:$8 sps:$4 sm:$0xff]  }
  0x16   :  { %1756 = vmatprep.mubr.msk.bf16.mxu1 %vm411_vm1, %v2373_v55  ;;  %v1989_v10 = vld [vmem:[%s2849_s2 + $0x4] ss:$8 sps:$4 sm:$0xff]   ;;  %v1987_v12 = vld [vmem:[%s2849_s2] ss:$8 sps:$4 sm:$0xff]   ;;  %v1995_v15 = vld [vmem:[%s2849_s2 + $0x14] ss:$8 sps:$4 sm:$0xff]  }
  0x17   :  { %436 = vmatpush1.bf16.msra.mxu0 %v1936_v22  ;;  %v1990_v13 = vld [vmem:[%s2847_s1 + $0xe0] ss:$8 sps:$4 sm:$0xff]   ;;  %v1993_v16 = vld [vmem:[%s2849_s2 + $0x10] ss:$8 sps:$4 sm:$0xff]   ;;  %v1999_v18 = vld [vmem:[%s2849_s2 + $0x24] ss:$8 sps:$4 sm:$0xff]  }
  0x18   :  { %477 = vmatpush1.bf16.msra.mxu1 %v1937_v23  ;;  %437 = vmatprep.subr.bf16.mxu0 %v1938_v24  ;;  %v1996_v17 = vld [vmem:[%s2847_s1 + $0xf0] ss:$8 sps:$4 sm:$0xff]   ;;  %v2002_v19 = vld [vmem:[%s2849_s2 + $0x104] ss:$8 sps:$4 sm:$0xff]   ;;  %v1997_v20 = vld [vmem:[%s2849_s2 + $0x20] ss:$8 sps:$4 sm:$0xff]  }
  0x19   :  { %478 = vmatprep.subr.bf16.mxu1 %v1940_v25  ;;  %v2000_v21 = vld [vmem:[%s2849_s2 + $0x100] ss:$8 sps:$4 sm:$0xff]   ;;  %v2005_v22 = vld [vmem:[%s2849_s2 + $0x34] ss:$8 sps:$4 sm:$0xff]   ;;  %v2003_v24 = vld [vmem:[%s2849_s2 + $0x30] ss:$8 sps:$4 sm:$0xff]  }
  0x1a   :  { %v2008_v23 = vld [vmem:[%s2849_s2 + $0x114] ss:$8 sps:$4 sm:$0xff]   ;;  %v2006_v25 = vld [vmem:[%s2849_s2 + $0x110] ss:$8 sps:$4 sm:$0xff]   ;;  %v2033_v45 = vld [vmem:[%s2849_s2 + $0x80] ss:$8 sps:$4 sm:$0xff]  }
  0x1b   :  { %438 = vmatpush1.bf16.msra.mxu0 %v1942_v26  ;;  %v2011_v26 = vld [vmem:[%s2849_s2 + $0x44] ss:$8 sps:$4 sm:$0xff]   ;;  %v2020_v31 = vld [vmem:[%s2849_s2 + $0x134] ss:$8 sps:$4 sm:$0xff]   ;;  %v2015_v32 = vld [vmem:[%s2849_s2 + $0x50] ss:$8 sps:$4 sm:$0xff]  }
  0x1c   :  { %479 = vmatpush1.bf16.msra.mxu1 %v1943_v27  ;;  %439 = vmatprep.subr.bf16.mxu0 %v1944_v28  ;;  %v2014_v27 = vld [vmem:[%s2849_s2 + $0x124] ss:$8 sps:$4 sm:$0xff]   ;;  %v2009_v28 = vld [vmem:[%s2849_s2 + $0x40] ss:$8 sps:$4 sm:$0xff]   ;;  %v2018_v33 = vld [vmem:[%s2849_s2 + $0x130] ss:$8 sps:$4 sm:$0xff]  }
  0x1d   :  { %480 = vmatprep.subr.bf16.mxu1 %v1946_v29  ;;  %v2012_v29 = vld [vmem:[%s2849_s2 + $0x120] ss:$8 sps:$4 sm:$0xff]   ;;  %v2032_v39 = vld [vmem:[%s2849_s2 + $0x154] ss:$8 sps:$4 sm:$0xff]   ;;  %v2039_v49 = vld [vmem:[%s2849_s2 + $0x90] ss:$8 sps:$4 sm:$0xff]  }
  0x1e   :  { %v2041_v47 = vld [vmem:[%s2849_s2 + $0x94] ss:$8 sps:$4 sm:$0xff]   ;;  %v2048_v56 = vld [vmem:[%s2849_s2 + $0x180] ss:$8 sps:$4 sm:$0xff]   ;;  %v2051_v59 = vld [vmem:[%s2849_s2 + $0xb0] ss:$8 sps:$4 sm:$0xff]  }
  0x1f   :  { %440 = vmatpush1.bf16.msra.mxu0 %v1948_v30  ;;  %v2017_v30 = vld [vmem:[%s2849_s2 + $0x54] ss:$8 sps:$4 sm:$0xff]   ;;  %v2057_v63 = vld [vmem:[%s2849_s2 + $0xc0] ss:$8 sps:$4 sm:$0xff]  }
  0x20   :  { %481 = vmatpush1.bf16.msra.mxu1 %v1949_v34  ;;  %441 = vmatprep.subr.bf16.mxu0 %v1950_v35  ;;  %v2023_v34 = vld [vmem:[%s2849_s2 + $0x64] ss:$8 sps:$4 sm:$0xff]   ;;  %v2056_v58 = vld [vmem:[%s2849_s2 + $0x194] ss:$8 sps:$4 sm:$0xff]  }
  0x21   :  { %482 = vmatprep.subr.bf16.mxu1 %v1952_v36  ;;  %v2026_v35 = vld [vmem:[%s2849_s2 + $0x144] ss:$8 sps:$4 sm:$0xff]   ;;  %v2021_v36 = vld [vmem:[%s2849_s2 + $0x60] ss:$8 sps:$4 sm:$0xff]   ;;  %v2068_v3 = vld [vmem:[%s2849_s2 + $0x1b4] ss:$8 sps:$4 sm:$0xff]  }
  0x23   :  { %442 = vmatpush1.bf16.msra.mxu0 %v1954_v37  ;;  %v2024_v37 = vld [vmem:[%s2849_s2 + $0x140] ss:$8 sps:$4 sm:$0xff]  }
  0x24   :  { %483 = vmatpush1.bf16.msra.mxu1 %v1955_v38  ;;  %443 = vmatprep.subr.bf16.mxu0 %v1956_v41  ;;  %v2029_v38 = vld [vmem:[%s2849_s2 + $0x74] ss:$8 sps:$4 sm:$0xff]   ;;  %v2027_v41 = vld [vmem:[%s2849_s2 + $0x70] ss:$8 sps:$4 sm:$0xff]  }
  0x25   :  { %484 = vmatprep.subr.bf16.mxu1 %v1958_v42  ;;  %v2030_v42 = vld [vmem:[%s2849_s2 + $0x150] ss:$8 sps:$4 sm:$0xff]  }
  0x27   :  { %444 = vmatpush1.bf16.msra.mxu0 %v1960_v43  ;;  %v2035_v43 = vld [vmem:[%s2849_s2 + $0x84] ss:$8 sps:$4 sm:$0xff]  }
  0x28   :  { %485 = vmatpush1.bf16.msra.mxu1 %v1961_v44  ;;  %445 = vmatprep.subr.bf16.mxu0 %v1962_v46  ;;  %v2038_v44 = vld [vmem:[%s2849_s2 + $0x164] ss:$8 sps:$4 sm:$0xff]   ;;  %v2036_v46 = vld [vmem:[%s2849_s2 + $0x160] ss:$8 sps:$4 sm:$0xff]  }
  0x29   :  { %486 = vmatprep.subr.bf16.mxu1 %v1964_v48  ;;  %v2044_v48 = vld [vmem:[%s2849_s2 + $0x174] ss:$8 sps:$4 sm:$0xff]  }
  0x2b   :  { %446 = vmatpush1.bf16.msra.mxu0 %v1966_v50  ;;  %v2042_v50 = vld [vmem:[%s2849_s2 + $0x170] ss:$8 sps:$4 sm:$0xff]  }
  0x2c   :  { %487 = vmatpush1.bf16.msra.mxu1 %v1967_v52  ;;  %447 = vmatprep.subr.bf16.mxu0 %v1968_v53  ;;  %v2047_v52 = vld [vmem:[%s2849_s2 + $0xa4] ss:$8 sps:$4 sm:$0xff]  }
  0x2d   :  { %488 = vmatprep.subr.bf16.mxu1 %v1970_v54  ;;  %v2050_v53 = vld [vmem:[%s2849_s2 + $0x184] ss:$8 sps:$4 sm:$0xff]   ;;  %v2045_v54 = vld [vmem:[%s2849_s2 + $0xa0] ss:$8 sps:$4 sm:$0xff]  }
  0x2f   :  { %448 = vmatpush1.bf16.msra.mxu0 %v1972_v57  ;;  %v2053_v57 = vld [vmem:[%s2849_s2 + $0xb4] ss:$8 sps:$4 sm:$0xff]  }
  0x30   :  { %489 = vmatpush1.bf16.msra.mxu1 %v1973_v60  ;;  %449 = vmatprep.subr.bf16.mxu0 %v1974_v61  ;;  %v2054_v60 = vld [vmem:[%s2849_s2 + $0x190] ss:$8 sps:$4 sm:$0xff]   ;;  %v2059_v61 = vld [vmem:[%s2849_s2 + $0xc4] ss:$8 sps:$4 sm:$0xff]  }
  0x31   :  { %490 = vmatprep.subr.bf16.mxu1 %v1976_v62  ;;  %v2062_v62 = vld [vmem:[%s2849_s2 + $0x1a4] ss:$8 sps:$4 sm:$0xff]  }
  0x33   :  { %450 = vmatpush1.bf16.msra.mxu0 %v1978_v1  ;;  %v2060_v1 = vld [vmem:[%s2849_s2 + $0x1a0] ss:$8 sps:$4 sm:$0xff]  }
  0x34   :  { %491 = vmatpush1.bf16.msra.mxu1 %v1979_v2  ;;  %451 = vmatprep.subr.bf16.mxu0 %v1980_v4  ;;  %v2065_v2 = vld [vmem:[%s2849_s2 + $0xd4] ss:$8 sps:$4 sm:$0xff]  }
  0x35   :  { %492 = vmatprep.subr.bf16.mxu1 %v423_v5  ;;  %v580_v4 = vld [vmem:[%s2849_s2 + $0x1d0] sm:$0x77] }
  0x36   :  { %v2063_v5 = vld [vmem:[%s2849_s2 + $0xd0] ss:$8 sps:$4 sm:$0xff]  }
  0x37   :  { %452 = vmatpush1.bf16.msra.mxu0 %v1983_v7  ;;  %v2066_v7 = vld [vmem:[%s2849_s2 + $0x1b0] ss:$8 sps:$4 sm:$0xff]  }
  0x38   :  { %493 = vmatpush1.bf16.msra.mxu1 %v420_v8  ;;  %453 = vmatprep.subr.bf16.mxu0 %v1985_v9  ;;  %v2071_v8 = vld [vmem:[%s2849_s2 + $0xe4] ss:$8 sps:$4 sm:$0xff]  }
  0x39   :  { %882 = vmatprep.subr.bf16.mxu1 %v1989_v10  ;;  %v2074_v9 = vld [vmem:[%s2849_s2 + $0x1c4] ss:$8 sps:$4 sm:$0xff]   ;;  %v1817_v10 = vcombine.high %v580_v4, %v580_v4 }
  0x3b   :  { %499 = vmatmul.mubr.bf16.vlgmr.msra.gmra.mrb[0].mxu1 %v2420_v11  ;;  %454 = vmatpush1.bf16.msra.mxu0 %v1990_v13  ;;  %v2072_v13 = vld [vmem:[%s2849_s2 + $0x1c0] ss:$8 sps:$4 sm:$0xff]  }
  0x3c   :  { %883 = vmatpush1.bf16.msra.mxu1 %v1987_v12  ;;  %455 = vmatprep.subr.bf16.mxu0 %v1991_v14  ;;  %v2069_v12 = vld [vmem:[%s2849_s2 + $0xe0] ss:$8 sps:$4 sm:$0xff]   ;;  %v1816_v14 = vcombine.low %v580_v4, %v580_v4  ;;  %v2146_v4 = vld [vmem:[%s2850_s3 + $0xb0] ss:$8 sps:$4 sm:$0xff]  }
  0x3d   :  { %884 = vmatprep.subr.bf16.mxu1 %v1995_v15  ;;  %914 = vmatprep.mubr.bf16.mxu1 %v2360_v51  ;;  %v2077_v15 = vld [vmem:[%s2849_s2 + $0xf4] ss:$8 sps:$4 sm:$0xff]  }
  0x3f   :  { %456 = vmatpush1.bf16.msra.mxu0 %v1996_v17  ;;  %v2075_v17 = vld [vmem:[%s2849_s2 + $0xf0] ss:$8 sps:$4 sm:$0xff]  }
  0x40   :  { %885 = vmatpush1.bf16.msra.mxu1 %v1993_v16  ;;  %923 = vmatprep.subr.bf16.mxu0 %v2002_v19  ;;  %v880_v16 = vand.u32 %v1817_v10, %v2394_v0  ;;  %v2082_v19 = vld [vmem:[%s2850_s3 + $0x4] ss:$8 sps:$4 sm:$0xff]   ;;  %v2152_v10 = vld [vmem:[%s2850_s3 + $0xc0] ss:$8 sps:$4 sm:$0xff]  }
  0x41   :  { %886 = vmatprep.subr.bf16.mxu1 %v1999_v18  ;;  %v877_v18 = vand.u32 %v1816_v14, %v2394_v0  ;;  %v2160_v14 = vld [vmem:[%s2850_s3 + $0xd4] ss:$8 sps:$4 sm:$0xff]  }
  0x42   :  { %458 = vmatmul.mubr.bf16.vlgmr.msra.gmra.mrb[0].mxu0 %v2406_v6 }
  0x43   :  { %924 = vmatpush1.bf16.msra.mxu0 %v2000_v21  ;;  %1818 = vmatprep.mubr.msk.bf16.mxu0 %vm411_vm1, %v2373_v55  ;;  %v2080_v21 = vld [vmem:[%s2850_s3] ss:$8 sps:$4 sm:$0xff]  }
  0x44   :  { %887 = vmatpush1.bf16.msra.mxu1 %v1997_v20  ;;  %925 = vmatprep.subr.bf16.mxu0 %v2008_v23  ;;  %v2085_v20 = vld [vmem:[%s2850_s3 + $0x104] ss:$8 sps:$4 sm:$0xff]   ;;  %v2088_v23 = vld [vmem:[%s2850_s3 + $0x14] ss:$8 sps:$4 sm:$0xff]  }
  0x45   :  { %888 = vmatprep.subr.bf16.mxu1 %v2005_v22  ;;  %v2083_v22 = vld [vmem:[%s2850_s3 + $0x100] ss:$8 sps:$4 sm:$0xff]  }
  0x47   :  { %926 = vmatpush1.bf16.msra.mxu0 %v2006_v25  ;;  %v2086_v25 = vld [vmem:[%s2850_s3 + $0x10] ss:$8 sps:$4 sm:$0xff]  }
  0x48   :  { %889 = vmatpush1.bf16.msra.mxu1 %v2003_v24  ;;  %927 = vmatprep.subr.bf16.mxu0 %v2014_v27  ;;  %v2091_v24 = vld [vmem:[%s2850_s3 + $0x114] ss:$8 sps:$4 sm:$0xff]   ;;  %v2094_v27 = vld [vmem:[%s2850_s3 + $0x24] ss:$8 sps:$4 sm:$0xff]  }
  0x49   :  { %890 = vmatprep.subr.bf16.mxu1 %v2011_v26  ;;  %v2089_v26 = vld [vmem:[%s2850_s3 + $0x110] ss:$8 sps:$4 sm:$0xff]  }
  0x4b   :  { %928 = vmatpush1.bf16.msra.mxu0 %v2012_v29  ;;  %v2092_v29 = vld [vmem:[%s2850_s3 + $0x20] ss:$8 sps:$4 sm:$0xff]  }
  0x4c   :  { %891 = vmatpush1.bf16.msra.mxu1 %v2009_v28  ;;  %929 = vmatprep.subr.bf16.mxu0 %v2020_v31  ;;  %v2097_v28 = vld [vmem:[%s2850_s3 + $0x124] ss:$8 sps:$4 sm:$0xff]   ;;  %v2100_v31 = vld [vmem:[%s2850_s3 + $0x34] ss:$8 sps:$4 sm:$0xff]  }
  0x4d   :  { %892 = vmatprep.subr.bf16.mxu1 %v2017_v30  ;;  %v2095_v30 = vld [vmem:[%s2850_s3 + $0x120] ss:$8 sps:$4 sm:$0xff]  }
  0x4f   :  { %930 = vmatpush1.bf16.msra.mxu0 %v2018_v33  ;;  %v2106_v33 = vld [vmem:[%s2850_s3 + $0x44] ss:$8 sps:$4 sm:$0xff]  }
  0x50   :  { %893 = vmatpush1.bf16.msra.mxu1 %v2015_v32  ;;  %931 = vmatprep.subr.bf16.mxu0 %v2026_v35  ;;  %v2101_v32 = vld [vmem:[%s2850_s3 + $0x130] ss:$8 sps:$4 sm:$0xff]   ;;  %v2104_v35 = vld [vmem:[%s2850_s3 + $0x40] ss:$8 sps:$4 sm:$0xff]  }
  0x51   :  { %894 = vmatprep.subr.bf16.mxu1 %v2023_v34  ;;  %v2109_v34 = vld [vmem:[%s2850_s3 + $0x144] ss:$8 sps:$4 sm:$0xff]  }
  0x53   :  { %932 = vmatpush1.bf16.msra.mxu0 %v2024_v37  ;;  %v2112_v37 = vld [vmem:[%s2850_s3 + $0x54] ss:$8 sps:$4 sm:$0xff]  }
  0x54   :  { %895 = vmatpush1.bf16.msra.mxu1 %v2021_v36  ;;  %933 = vmatprep.subr.bf16.mxu0 %v2032_v39  ;;  %v2107_v36 = vld [vmem:[%s2850_s3 + $0x140] ss:$8 sps:$4 sm:$0xff]   ;;  %v2110_v39 = vld [vmem:[%s2850_s3 + $0x50] ss:$8 sps:$4 sm:$0xff]  }
  0x55   :  { %896 = vmatprep.subr.bf16.mxu1 %v2029_v38  ;;  %v2115_v38 = vld [vmem:[%s2850_s3 + $0x154] ss:$8 sps:$4 sm:$0xff]  }
  0x57   :  { %934 = vmatpush1.bf16.msra.mxu0 %v2030_v42  ;;  %v2118_v42 = vld [vmem:[%s2850_s3 + $0x64] ss:$8 sps:$4 sm:$0xff]  }
  0x58   :  { %897 = vmatpush1.bf16.msra.mxu1 %v2027_v41  ;;  %935 = vmatprep.subr.bf16.mxu0 %v2038_v44  ;;  %v2113_v41 = vld [vmem:[%s2850_s3 + $0x150] ss:$8 sps:$4 sm:$0xff]   ;;  %v2116_v44 = vld [vmem:[%s2850_s3 + $0x60] ss:$8 sps:$4 sm:$0xff]  }
  0x59   :  { %898 = vmatprep.subr.bf16.mxu1 %v2035_v43  ;;  %v2121_v43 = vld [vmem:[%s2850_s3 + $0x164] ss:$8 sps:$4 sm:$0xff]  }
  0x5b   :  { %936 = vmatpush1.bf16.msra.mxu0 %v2036_v46  ;;  %v2124_v46 = vld [vmem:[%s2850_s3 + $0x74] ss:$8 sps:$4 sm:$0xff]  }
  0x5c   :  { %899 = vmatpush1.bf16.msra.mxu1 %v2033_v45  ;;  %937 = vmatprep.subr.bf16.mxu0 %v2044_v48  ;;  %v2119_v45 = vld [vmem:[%s2850_s3 + $0x160] ss:$8 sps:$4 sm:$0xff]   ;;  %v2122_v48 = vld [vmem:[%s2850_s3 + $0x70] ss:$8 sps:$4 sm:$0xff]  }
  0x5d   :  { %900 = vmatprep.subr.bf16.mxu1 %v2041_v47  ;;  %v2127_v47 = vld [vmem:[%s2850_s3 + $0x174] ss:$8 sps:$4 sm:$0xff]  }
  0x5f   :  { %938 = vmatpush1.bf16.msra.mxu0 %v2042_v50  ;;  %v2130_v50 = vld [vmem:[%s2850_s3 + $0x84] ss:$8 sps:$4 sm:$0xff]  }
  0x60   :  { %901 = vmatpush1.bf16.msra.mxu1 %v2039_v49  ;;  %939 = vmatprep.subr.bf16.mxu0 %v2050_v53  ;;  %v2125_v49 = vld [vmem:[%s2850_s3 + $0x170] ss:$8 sps:$4 sm:$0xff]   ;;  %v2128_v53 = vld [vmem:[%s2850_s3 + $0x80] ss:$8 sps:$4 sm:$0xff]  }
  0x61   :  { %902 = vmatprep.subr.bf16.mxu1 %v2047_v52  ;;  %v2133_v52 = vld [vmem:[%s2850_s3 + $0x184] ss:$8 sps:$4 sm:$0xff]  }
  0x63   :  { %940 = vmatpush1.bf16.msra.mxu0 %v2048_v56  ;;  %v2136_v56 = vld [vmem:[%s2850_s3 + $0x94] ss:$8 sps:$4 sm:$0xff]  }
  0x64   :  { %903 = vmatpush1.bf16.msra.mxu1 %v2045_v54  ;;  %941 = vmatprep.subr.bf16.mxu0 %v2056_v58  ;;  %v2131_v54 = vld [vmem:[%s2850_s3 + $0x180] ss:$8 sps:$4 sm:$0xff]   ;;  %v2134_v58 = vld [vmem:[%s2850_s3 + $0x90] ss:$8 sps:$4 sm:$0xff]  }
  0x65   :  { %904 = vmatprep.subr.bf16.mxu1 %v2053_v57  ;;  %v2139_v57 = vld [vmem:[%s2850_s3 + $0x194] ss:$8 sps:$4 sm:$0xff]  }
  0x67   :  { %942 = vmatpush1.bf16.msra.mxu0 %v2054_v60  ;;  %v2142_v60 = vld [vmem:[%s2850_s3 + $0xa4] ss:$8 sps:$4 sm:$0xff]  }
  0x68   :  { %905 = vmatpush1.bf16.msra.mxu1 %v2051_v59  ;;  %943 = vmatprep.subr.bf16.mxu0 %v2062_v62  ;;  %v2137_v59 = vld [vmem:[%s2850_s3 + $0x190] ss:$8 sps:$4 sm:$0xff]   ;;  %v2140_v62 = vld [vmem:[%s2850_s3 + $0xa0] ss:$8 sps:$4 sm:$0xff]  }
  0x69   :  { %906 = vmatprep.subr.bf16.mxu1 %v2059_v61  ;;  %v2145_v61 = vld [vmem:[%s2850_s3 + $0x1a4] ss:$8 sps:$4 sm:$0xff]  }
  0x6b   :  { %944 = vmatpush1.bf16.msra.mxu0 %v2060_v1  ;;  %v2148_v1 = vld [vmem:[%s2850_s3 + $0xb4] ss:$8 sps:$4 sm:$0xff]  }
  0x6c   :  { %907 = vmatpush1.bf16.msra.mxu1 %v2057_v63  ;;  %945 = vmatprep.subr.bf16.mxu0 %v2068_v3  ;;  %v2143_v63 = vld [vmem:[%s2850_s3 + $0x1a0] ss:$8 sps:$4 sm:$0xff]   ;;  %v1037_v3 = vld [vmem:[%s2850_s3 + $0x1d0] sm:$0x77] }
  0x6d   :  { %908 = vmatprep.subr.bf16.mxu1 %v2065_v2  ;;  %v2151_v2 = vld [vmem:[%s2850_s3 + $0x1b4] ss:$8 sps:$4 sm:$0xff]  }
  0x6f   :  { %946 = vmatpush1.bf16.msra.mxu0 %v2066_v7  ;;  %v2154_v7 = vld [vmem:[%s2850_s3 + $0xc4] ss:$8 sps:$4 sm:$0xff]  }
  0x70   :  { %909 = vmatpush1.bf16.msra.mxu1 %v2063_v5  ;;  %947 = vmatprep.subr.bf16.mxu0 %v2074_v9  ;;  %v2149_v5 = vld [vmem:[%s2850_s3 + $0x1b0] ss:$8 sps:$4 sm:$0xff]   ;;  %v1879_v9 = vcombine.high %v1037_v3, %v1037_v3 }
  0x71   :  { %910 = vmatprep.subr.bf16.mxu1 %v2071_v8  ;;  %v2157_v8 = vld [vmem:[%s2850_s3 + $0x1c4] ss:$8 sps:$4 sm:$0xff]  }
  0x73   :  { %948 = vmatpush1.bf16.msra.mxu0 %v2072_v13  ;;  %v1878_v13 = vcombine.low %v1037_v3, %v1037_v3 }
  0x74   :  { %911 = vmatpush1.bf16.msra.mxu1 %v2069_v12  ;;  %949 = vmatprep.subr.bf16.mxu0 %v880_v16  ;;  %v2155_v12 = vld [vmem:[%s2850_s3 + $0x1c0] ss:$8 sps:$4 sm:$0xff]   ;;  %v2158_v16 = vld [vmem:[%s2850_s3 + $0xd0] ss:$8 sps:$4 sm:$0xff]  }
  0x75   :  { %912 = vmatprep.subr.bf16.mxu1 %v2077_v15  ;;  %v1337_v15 = vand.u32 %v1879_v9, %v2394_v0 }
  0x77   :  { %950 = vmatpush1.bf16.msra.mxu0 %v877_v18  ;;  %v2165_v18 = vld [vmem:[%s2850_s3 + $0xe4] ss:$8 sps:$4 sm:$0xff]  }
  0x78   :  { %913 = vmatpush1.bf16.msra.mxu1 %v2075_v17  ;;  %1339 = vmatprep.subr.bf16.mxu0 %v2082_v19  ;;  %v1334_v17 = vand.u32 %v1878_v13, %v2394_v0  ;;  %v2168_v19 = vld [vmem:[%s2851_s6 + $0x4] ss:$8 sps:$4 sm:$0xff]   ;;  %v2166_v0 = vld [vmem:[%s2851_s6] ss:$8 sps:$4 sm:$0xff]  }
  0x79   :  { %1380 = vmatprep.subr.bf16.mxu1 %v2085_v20  ;;  %v2163_v20 = vld [vmem:[%s2850_s3 + $0xe0] ss:$8 sps:$4 sm:$0xff]  }
  0x7a   :  { %956 = vmatmul.mubr.bf16.vlgmr.msra.gmra.mrb[4].mxu0 %v2420_v11 }
  0x7b   :  { %915 = vmatmul.mubr.bf16.vlgmr.msra.gmra.mrb[4].mxu1 %v2406_v6  ;;  %1340 = vmatpush1.bf16.msra.mxu0 %v2080_v21  ;;  %v2171_v21 = vld [vmem:[%s2850_s3 + $0xf4] ss:$8 sps:$4 sm:$0xff]  }
  0x7c   :  { %1381 = vmatpush1.bf16.msra.mxu1 %v2083_v22  ;;  %1341 = vmatprep.subr.bf16.mxu0 %v2088_v23  ;;  %v2174_v22 = vld [vmem:[%s2851_s6 + $0x14] ss:$8 sps:$4 sm:$0xff]   ;;  %v2169_v23 = vld [vmem:[%s2850_s3 + $0xf0] ss:$8 sps:$4 sm:$0xff]  }
  0x7d   :  { %1382 = vmatprep.subr.bf16.mxu1 %v2091_v24  ;;  %1880 = vmatprep.mubr.msk.bf16.mxu1 %vm411_vm1, %v2373_v55  ;;  %v2098_v55 = vld [vmem:[%s2850_s3 + $0x30] ss:$8 sps:$4 sm:$0xff]  }
  0x7e   :  { %1371 = vmatprep.mubr.bf16.mxu0 %v2360_v51  ;;  %v2103_v51 = vld [vmem:[%s2850_s3 + $0x134] ss:$8 sps:$4 sm:$0xff]   ;;  %v2172_v24 = vld [vmem:[%s2851_s6 + $0x10] ss:$8 sps:$4 sm:$0xff]  }
  0x7f   :  { %1342 = vmatpush1.bf16.msra.mxu0 %v2086_v25  ;;  %v2177_v25 = vld [vmem:[%s2851_s6 + $0x24] ss:$8 sps:$4 sm:$0xff]  }
  0x80   :  { %1383 = vmatpush1.bf16.msra.mxu1 %v2089_v26  ;;  %1343 = vmatprep.subr.bf16.mxu0 %v2094_v27  ;;  %v2184_v26 = vmov 0   ;;  %v2175_v27 = vld [vmem:[%s2851_s6 + $0x20] ss:$8 sps:$4 sm:$0xff]  }
  0x81   :  { %1384 = vmatprep.subr.bf16.mxu1 %v2097_v28 }
  0x83   :  { %1344 = vmatpush1.bf16.msra.mxu0 %v2092_v29 }
  0x84   :  { %1385 = vmatpush1.bf16.msra.mxu1 %v2095_v30  ;;  %1345 = vmatprep.subr.bf16.mxu0 %v2100_v31  ;;  %v2180_v31 = vld [vmem:[%s2852_s5] sm:$0xff]  }
  0x85   :  { %1386 = vmatprep.subr.bf16.mxu1 %v2103_v51  ;;  %v2181_v51 = vld [vmem:[%s2852_s5 + $0x8] ss:$0 sps:$4 sm:$0xff]  }
  0x87   :  { %1346 = vmatpush1.bf16.msra.mxu0 %v2098_v55 }
  0x88   :  { %1387 = vmatpush1.bf16.msra.mxu1 %v2101_v32  ;;  %1347 = vmatprep.subr.bf16.mxu0 %v2106_v33 }
  0x89   :  { %1388 = vmatprep.subr.bf16.mxu1 %v2109_v34 }
  0x8b   :  { %1348 = vmatpush1.bf16.msra.mxu0 %v2104_v35 }
  0x8c   :  { %1389 = vmatpush1.bf16.msra.mxu1 %v2107_v36  ;;  %1349 = vmatprep.subr.bf16.mxu0 %v2112_v37 }
  0x8d   :  { %1390 = vmatprep.subr.bf16.mxu1 %v2115_v38 }
  0x8f   :  { %1350 = vmatpush1.bf16.msra.mxu0 %v2110_v39 }
  0x90   :  { %1391 = vmatpush1.bf16.msra.mxu1 %v2113_v41  ;;  %1351 = vmatprep.subr.bf16.mxu0 %v2118_v42 }
  0x91   :  { %1392 = vmatprep.subr.bf16.mxu1 %v2121_v43 }
  0x93   :  { %1352 = vmatpush1.bf16.msra.mxu0 %v2116_v44 }
  0x94   :  { %1393 = vmatpush1.bf16.msra.mxu1 %v2119_v45  ;;  %1353 = vmatprep.subr.bf16.mxu0 %v2124_v46 }
  0x95   :  { %1394 = vmatprep.subr.bf16.mxu1 %v2127_v47 }
  0x97   :  { %1354 = vmatpush1.bf16.msra.mxu0 %v2122_v48 }
  0x98   :  { %1395 = vmatpush1.bf16.msra.mxu1 %v2125_v49  ;;  %1355 = vmatprep.subr.bf16.mxu0 %v2130_v50 }
  0x99   :  { %1396 = vmatprep.subr.bf16.mxu1 %v2133_v52 }
  0x9b   :  { %1356 = vmatpush1.bf16.msra.mxu0 %v2128_v53 }
  0x9c   :  { %1397 = vmatpush1.bf16.msra.mxu1 %v2131_v54  ;;  %1357 = vmatprep.subr.bf16.mxu0 %v2136_v56 }
  0x9d   :  { %1398 = vmatprep.subr.bf16.mxu1 %v2139_v57  ;;  %v1757_v57 = vld [vmem:[%s2853_s4 + $0x1] ss:$4 sm:$0x3] }
  0x9f   :  { %1358 = vmatpush1.bf16.msra.mxu0 %v2134_v58  ;;  %v1819_v58 = vld [vmem:[%s2853_s4 + $0x2] ss:$4 sm:$0x3] }
  0xa0   :  { %1399 = vmatpush1.bf16.msra.mxu1 %v2137_v59  ;;  %1359 = vmatprep.subr.bf16.mxu0 %v2142_v60  ;;  %v510_v59 = vsub.s32 0, %v2333_v40  ;;  %v514_v60 = vsub.s32 1, %v2333_v40 }
  0xa1   :  { %1400 = vmatprep.subr.bf16.mxu1 %v2145_v61 }
  0xa2   :  { %v968_v61 = vrot.slane %v1757_v57, %v510_v59  ;;  %v1429_v3 = vrot.slane %v1819_v58, %v514_v60 }
  0xa3   :  { %1360 = vmatpush1.bf16.msra.mxu0 %v2140_v62  ;;  %v1425_v62 = vrot.slane %v1819_v58, %v510_v59 }
  0xa4   :  { %1401 = vmatpush1.bf16.msra.mxu1 %v2143_v63  ;;  %1361 = vmatprep.subr.bf16.mxu0 %v2148_v1  ;;  %v28_v63 = vld [vmem:[%s2853_s4] ss:$4 sm:$0x3]  ;;  %v972_v1 = vrot.slane %v1757_v57, %v514_v60 }
  0xa5   :  { %1402 = vmatprep.subr.bf16.mxu1 %v2151_v2  ;;  %v511_v9 = vrot.slane %v28_v63, %v510_v59 }
  0xa7   :  { %1362 = vmatpush1.bf16.msra.mxu0 %v2146_v4 }
  0xa8   :  { %1403 = vmatpush1.bf16.msra.mxu1 %v2149_v5  ;;  %1363 = vmatprep.subr.bf16.mxu0 %v2154_v7 }
  0xa9   :  { %1404 = vmatprep.subr.bf16.mxu1 %v2157_v8 }
  0xab   :  { %1364 = vmatpush1.bf16.msra.mxu0 %v2152_v10 }
  0xac   :  { %1405 = vmatpush1.bf16.msra.mxu1 %v2155_v12  ;;  %1365 = vmatprep.subr.bf16.mxu0 %v2160_v14  ;;  %v515_v14 = vrot.slane %v28_v63, %v514_v60 }
  0xad   :  { %1406 = vmatprep.subr.bf16.mxu1 %v1337_v15 }
  0xaf   :  { %1366 = vmatpush1.bf16.msra.mxu0 %v2158_v16 }
  0xb0   :  { %1407 = vmatpush1.bf16.msra.mxu1 %v1334_v17  ;;  %1367 = vmatprep.subr.bf16.mxu0 %v2165_v18 }
  0xb1   :  { %1500 = vmatprep.subr.bf16.mxu1 %v2168_v19 }
  0xb3   :  { %1413 = vmatmul.mubr.bf16.vlgmr.msra.gmra.mrb[8].mxu1 %v2420_v11  ;;  %1368 = vmatpush1.bf16.msra.mxu0 %v2163_v20  ;;  %v1443_v11 = vld [vmem:[%s2851_s6 + $0x30] sm:$0x33] }
  0xb4   :  { %1501 = vmatpush1.bf16.msra.mxu1 %v2166_v0  ;;  %1369 = vmatprep.subr.bf16.mxu0 %v2171_v21  ;;  %v1890_v28 = vcombine.high %v1443_v11, %v1443_v11  ;;  %v1889_v29 = vcombine.low %v1443_v11, %v1443_v11 }
  0xb5   :  { %1502 = vmatprep.subr.bf16.mxu1 %v2174_v22  ;;  %1532 = vmatprep.mubr.bf16.mxu1 %v2184_v26 }
  0xb6   :  { %v1495_v30 = vsel %vm415_vm0, %v1889_v29, 0 }
  0xb7   :  { %1370 = vmatpush1.bf16.msra.mxu0 %v2169_v23 }
  0xb8   :  { %1503 = vmatpush1.bf16.msra.mxu1 %v2172_v24 }
  0xb9   :  { %1504 = vmatprep.subr.bf16.mxu1 %v2177_v25 }
  0xba   :  { %1372 = vmatmul.mubr.bf16.vlgmr.msra.gmra.mrb[8].mxu0 %v2406_v6 }
  0xbc   :  { %1505 = vmatpush1.bf16.msra.mxu1 %v2175_v27 }
  0xbd   :  { %1891 = vmatprep.subr.msk.bf16.mxu1 %vm415_vm0, %v1890_v28 }
  0xc0   :  { %1507 = vmatpush1.bf16.msra.mxu1 %v1495_v30 }
  0xc3   :  { %1892 = vmatmul.mubr.msk.bf16.vlgmr.msra.gmra.mrb[12].mxu1 %vm1487_vm3, %v2180_v31 }
  0xc4   :  { %1542 = vmatprep.mubr.bf16.mxu1 %v2184_v26 }
  0xcb   :  { %1893 = vmatmul.mubr.msk.bf16.gmra.mrb[16].mxu1 %vm1487_vm3, %v2181_v51 }
 0x10e   :  { %v500_v55 = vpop.f32.mrb[0].mxu1 }
 0x10f   :  { %v502_v6 = vpop.f32.mrb[1].mxu1 }
 0x110   :  { %v504_v32 = vpop.f32.mrb[2].mxu1 }
 0x111   :  { %v505_v33 = vpop.f32.mrb[3].mxu1 }
 0x115   :  { %v459_v34 = vpop.f32.mrb[0].mxu0 }
 0x116   :  { %v501_v35 = vadd.f32 %v500_v55, %v459_v34  ;;  %v461_v36 = vpop.f32.mrb[1].mxu0 }
 0x117   :  { %v503_v37 = vadd.f32 %v502_v6, %v461_v36  ;;  %v463_v38 = vpop.f32.mrb[2].mxu0 }
 0x118   :  { %v464_v39 = vpop.f32.mrb[3].mxu0  ;;  %v518_v16 = vadd.f32 %v511_v9, %v501_v35 }
 0x119   :  { %v519_v19 = vadd.f32 %v515_v14, %v503_v37 }
 0x14d   :  { %v957_v42 = vpop.f32.mrb[4].mxu0 }
 0x14e   :  { %v916_v41 = vpop.f32.mrb[4].mxu1  ;;  %v959_v45 = vpop.f32.mrb[5].mxu0 }
 0x14f   :  { %v958_v43 = vadd.f32 %v957_v42, %v916_v41  ;;  %v918_v44 = vpop.f32.mrb[5].mxu1  ;;  %v961_v48 = vpop.f32.mrb[6].mxu0 }
 0x150   :  { %v960_v46 = vadd.f32 %v959_v45, %v918_v44  ;;  %v920_v47 = vpop.f32.mrb[6].mxu1  ;;  %v962_v50 = vpop.f32.mrb[7].mxu0 }
 0x151   :  { %v921_v49 = vpop.f32.mrb[7].mxu1  ;;  %v975_v10 = vadd.f32 %v968_v61, %v958_v43 }
 0x152   :  { %v976_v15 = vadd.f32 %v972_v1, %v960_v46 }
 0x153   :  { %v1555_v17 = vrot.slane %v975_v10, 6 }
 0x154   :  { %v1556_v20 = vrot.slane %v976_v15, 6 }
 0x186   :  { %v1414_v52 = vpop.f32.mrb[8].mxu1 }
 0x187   :  { %v1416_v53 = vpop.f32.mrb[9].mxu1 }
 0x188   :  { %v1418_v54 = vpop.f32.mrb[10].mxu1 }
 0x189   :  { %v1419_v56 = vpop.f32.mrb[11].mxu1 }
 0x18d   :  { %v1373_v2 = vpop.f32.mrb[8].mxu0 }
 0x18e   :  { %v1415_v4 = vadd.f32 %v1414_v52, %v1373_v2  ;;  %v1375_v5 = vpop.f32.mrb[9].mxu0 }
 0x18f   :  { %v1417_v7 = vadd.f32 %v1416_v53, %v1375_v5  ;;  %v1377_v8 = vpop.f32.mrb[10].mxu0 }
 0x190   :  { %v1432_v12 = vadd.f32 %v1425_v62, %v1415_v4  ;;  %v1378_v13 = vpop.f32.mrb[11].mxu0 }
 0x191   :  { %v1433_v40 = vadd.f32 %v1429_v3, %v1417_v7 }
 0x192   :  { %v1571_v18 = vrot.slane %v1432_v12, 4 }
 0x193   :  { %v1572_v0 = vrot.slane %v1433_v40, 4 }
 0x196   :  { %v1534_v21 = vpop.f32.mrb[12].mxu1 }
 0x197   :  { %v1551_v22 = vmul.f32 %v1534_v21, %v518_v16  ;;  %v1559_v23 = vmul.f32 %v1555_v17, %v1534_v21  ;;  %v1575_v24 = vmul.f32 %v1571_v18, %v1534_v21  ;;  %v1536_v25 = vpop.f32.mrb[13].mxu1  ;;  %v1587_v37 = vrot.slane %v1534_v21, 6 }
 0x198   :  { %v1552_v11 = vmul.f32 %v1536_v25, %v519_v19  ;;  %v1560_v26 = vmul.f32 %v1556_v20, %v1536_v25  ;;  %v1576_v27 = vmul.f32 %v1572_v0, %v1536_v25  ;;  %v1538_v28 = vpop.f32.mrb[14].mxu1  ;;  %v1588_v47 = vrot.slane %v1536_v25, 6 }
 0x199   :  { %v1563_v29 = vrot.slane %v1559_v23, 2  ;;  %v1605_v30 = vmul.f32 %v1538_v28, %v518_v16  ;;  %v1607_v31 = vmul.f32 %v1555_v17, %v1538_v28  ;;  %v1540_v51 = vpop.f32.mrb[15].mxu1  ;;  %v1579_v55 = vrot.slane %v1575_v24, 4 }
 0x19a   :  { %v1564_v6 = vrot.slane %v1560_v26, 2  ;;  %v1617_v32 = vmul.f32 %v1571_v18, %v1538_v28  ;;  %v1606_v35 = vmul.f32 %v1540_v51, %v519_v19  ;;  %v1608_v36 = vmul.f32 %v1556_v20, %v1540_v51 }
 0x19b   :  { %v1567_v33 = vadd.f32 %v1563_v29, %v1551_v22  ;;  %v1611_v34 = vrot.slane %v1607_v31, 2  ;;  %v1580_v39 = vrot.slane %v1576_v27, 4  ;;  %v1618_v41 = vmul.f32 %v1572_v0, %v1540_v51 }
 0x19c   :  { %v1568_v38 = vadd.f32 %v1564_v6, %v1552_v11  ;;  %v1621_v44 = vrot.slane %v1617_v32, 4  ;;  %v1612_v45 = vrot.slane %v1608_v36, 2  ;;  %v1629_v48 = vrot.slane %v1538_v28, 6 }
 0x19d   :  { %v1583_v42 = vadd.f32 %v1579_v55, %v1567_v33  ;;  %v1615_v43 = vadd.f32 %v1611_v34, %v1605_v30  ;;  %v1622_v49 = vrot.slane %v1618_v41, 4  ;;  %v1630_v59 = vrot.slane %v1540_v51, 6 }
 0x19e   :  { %v1584_v46 = vadd.f32 %v1580_v39, %v1568_v38  ;;  %v1544_v50 = vpop.f32.mrb[16].mxu1  ;;  %v1616_v54 = vadd.f32 %v1612_v45, %v1606_v35 }
 0x19f   :  { %v1591_v52 = vadd.f32 %v1587_v37, %v1583_v42  ;;  %v1625_v53 = vadd.f32 %v1621_v44, %v1615_v43  ;;  %v1648_v56 = vmul.f32 %v1544_v50, %v518_v16  ;;  %v1546_v57 = vpop.f32.mrb[17].mxu1  ;;  %v1650_v60 = vmul.f32 %v1555_v17, %v1544_v50 }
 0x1a0   :  { %v1592_v58 = vadd.f32 %v1588_v47, %v1584_v46  ;;  %v1660_v61 = vmul.f32 %v1571_v18, %v1544_v50  ;;  %v1548_v62 = vpop.f32.mrb[18].mxu1  ;;  %v1626_v1 = vadd.f32 %v1622_v49, %v1616_v54  ;;  %v1649_v2 = vmul.f32 %v1546_v57, %v519_v19 }
 0x1a1   :  { %v1633_v63 = vadd.f32 %v1629_v48, %v1625_v53  ;;  %v1651_v3 = vmul.f32 %v1556_v20, %v1546_v57  ;;  %v1549_v4 = vpop.f32.mrb[19].mxu1  ;;  %v1654_v7 = vrot.slane %v1650_v60, 2  ;;  %v1661_v8 = vmul.f32 %v1572_v0, %v1546_v57 }
 0x1a2   :  { %v1595_v5 = vcombine.low %v1591_v52, %v1592_v58  ;;  %v1634_v9 = vadd.f32 %v1630_v59, %v1626_v1  ;;  %v1664_v13 = vrot.slane %v1660_v61, 4  ;;  %v1672_v17 = vrot.slane %v1544_v50, 6 }
 0x1a3   :  { %v1655_v10 = vrot.slane %v1651_v3, 2  ;;  %v1658_v12 = vadd.f32 %v1654_v7, %v1648_v56  ;;  %v1665_v40 = vrot.slane %v1661_v8, 4  ;;  %v1673_v19 = vrot.slane %v1546_v57, 6 }
 0x1a4   :  { %1894 = vst.sshfl [vmem:[%s2854_s7] sm:$0x33 pattern:$0x76325410] %v1595_v5  ;;  %v1637_v14 = vcombine.low %v1633_v63, %v1634_v9 }
 0x1a5   :  { %v1659_v15 = vadd.f32 %v1655_v10, %v1649_v2  ;;  %v1668_v16 = vadd.f32 %v1664_v13, %v1658_v12 }
 0x1a6   :  { %1897 = vst.sshfl [vmem:[%s2854_s7 + $0x4] sm:$0x33 pattern:$0x76325410] %v1637_v14 }
 0x1a7   :  { %v1669_v18 = vadd.f32 %v1665_v40, %v1659_v15  ;;  %v1676_v20 = vadd.f32 %v1672_v17, %v1668_v16 }
 0x1a9   :  { %v1677_v0 = vadd.f32 %v1673_v19, %v1669_v18 }
 0x1ab   :  { %v1680_v21 = vcombine.low %v1676_v20, %v1677_v0 }
 0x1ad   :  { %1898 = vst.sshfl [vmem:[%s2854_s7 + $0x8] sm:$0x33 pattern:$0x76325410] %v1680_v21 }

</bundles_post_ra>
